<compile_context>
chip_gen: v7x
topology: tpu7x:2x2x1
jax: 0.10.0
libtpu: 0.0.40
codegen_flags: <defaults>
</compile_context>

<pallas_src>
import functools
import math

import jax
import jax.numpy as jnp
from jax.experimental import pallas as pl
from jax.experimental.pallas import tpu as pltpu


_VMEM_LIMIT = 48 * 1024 * 1024  # fits v5e/v6e (128 MiB phys) and v7x (64 MiB phys)


# --------------------------- tiling utils ------------------------------------

def _choose_tile(dim, target, align):
    """Largest tile <= target that exactly divides dim (multiple of align).

    Small dims use a single full-extent block; if no aligned divisor exists we
    also fall back to the full extent (never pad, never slice)."""
    if dim <= target:
        return dim
    t = (target // align) * align
    while t >= align:
        if dim % t == 0:
            return t
        t -= align
    return dim


def _head_group(heads, dh):
    """Heads per attention grid step; aims for a 128-lane-aligned group width."""
    g = min(heads, max(1, 128 // dh))
    while heads % g != 0:
        g -= 1
    return max(g, 1)


def _qkv_group_perm(width, heads, dh, g_heads):
    """Column permutation: CLIP [q_all|k_all|v_all] -> per-head-group [q|k|v]."""
    idx = []
    for g0 in range(0, heads, g_heads):
        for which in range(3):                      # q, k, v of this head group
            for h in range(g0, g0 + g_heads):
                base = which * width + h * dh
                idx.extend(range(base, base + dh))
    return jnp.asarray(idx, dtype=jnp.int32)


# ----------------------------- Pallas kernels --------------------------------

def _linear_kernel(*refs, act, has_residual):
    """K-tiled matmul: fp32 VMEM acc += bf16(x) @ bf16(w); bias/act/residual epilogue."""
    if has_residual:
        x_ref, w_ref, b_ref, r_ref, o_ref, acc_ref = refs
    else:
        x_ref, w_ref, b_ref, o_ref, acc_ref = refs
        r_ref = None

    k = pl.program_id(2)

    @pl.when(k == 0)
    def _():
        acc_ref[...] = jnp.zeros_like(acc_ref)

    acc_ref[...] += jnp.dot(
        x_ref[...].astype(jnp.bfloat16), w_ref[...].astype(jnp.bfloat16),
        preferred_element_type=jnp.float32)

    @pl.when(k == pl.num_programs(2) - 1)
    def _():
        y = acc_ref[...] + b_ref[...]
        if act == "quickgelu":                      # fp32 epilogue on accumulator
            y = y * jax.nn.sigmoid(1.702 * y)
        if r_ref is not None:
            y = y + r_ref[...].astype(jnp.float32)
        o_ref[...] = y.astype(o_ref.dtype)


def _linear_single_k_kernel(*refs, act, has_residual):
    """Single-shot K matmul (no accumulator / K grid axis)."""
    if has_residual:
        x_ref, w_ref, b_ref, r_ref, o_ref = refs
    else:
        x_ref, w_ref, b_ref, o_ref = refs
        r_ref = None
    y = jnp.dot(x_ref[...].astype(jnp.bfloat16), w_ref[...].astype(jnp.bfloat16),
                preferred_element_type=jnp.float32) + b_ref[...]
    if act == "quickgelu":
        y = y * jax.nn.sigmoid(1.702 * y)
    if r_ref is not None:
        y = y + r_ref[...].astype(jnp.float32)
    o_ref[...] = y.astype(o_ref.dtype)


def _ln_linear_kernel(x_ref, g_ref, bln_ref, w_ref, b_ref, o_ref, h_ref, *, act):
    """Fused LayerNorm (fp32 stats, cached across N tiles) -> bf16 matmul -> epilogue."""
    @pl.when(pl.program_id(1) == 0)                 # compute LN once per row tile
    def _():
        x = x_ref[...].astype(jnp.float32)          # (tm, K), K = full feature dim
        mu = jnp.mean(x, axis=-1, keepdims=True)
        var = jnp.mean((x - mu) ** 2, axis=-1, keepdims=True)
        hn = (x - mu) * jax.lax.rsqrt(var + 1e-5) * g_ref[...] + bln_ref[...]
        h_ref[...] = hn.astype(jnp.bfloat16)

    y = jnp.dot(h_ref[...], w_ref[...].astype(jnp.bfloat16),
                preferred_element_type=jnp.float32) + b_ref[...]
    if act == "quickgelu":
        y = y * jax.nn.sigmoid(1.702 * y)
    o_ref[...] = y.astype(o_ref.dtype)


def _add_pos_ln_kernel(x_ref, pos_ref, g_ref, b_ref, o_ref):
    """(tokens + positional embedding) -> ln_pre, fused (one HBM pass, bf16 out)."""
    x = x_ref[0].astype(jnp.float32) + pos_ref[...]
    mu = jnp.mean(x, axis=-1, keepdims=True)
    var = jnp.mean((x - mu) ** 2, axis=-1, keepdims=True)
    o_ref[0] = ((x - mu) * jax.lax.rsqrt(var + 1e-5) * g_ref[...]
                + b_ref[...]).astype(o_ref.dtype)


def _attention_kernel(qkv_ref, o_ref, *, g_heads, dh, scale):
    """One (batch, head-group) per grid step.

    qkv_ref: [1, T, 3*g_heads*dh] bf16 in grouped layout [q_group | k_group | v_group].
    """
    gd = g_heads * dh
    qkv = qkv_ref[0]                                # (T, 3*gd) bf16
    qg = qkv[:, 0:gd]
    kg = qkv[:, gd:2 * gd]
    vg = qkv[:, 2 * gd:3 * gd]
    outs = []
    for h in range(g_heads):                        # static unroll over heads in group
        q = qg[:, h * dh:(h + 1) * dh]
        k = kg[:, h * dh:(h + 1) * dh]
        v = vg[:, h * dh:(h + 1) * dh]
        # contract on dh directly: no explicit k.T / transpose
        s = jax.lax.dot_general(q, k, (((1,), (1,)), ((), ())),
                                preferred_element_type=jnp.float32) * scale
        s = s - jnp.max(s, axis=-1, keepdims=True)
        p = jnp.exp(s)
        inv = pl.reciprocal(jnp.sum(p, axis=-1, keepdims=True), approx=True)
        p = (p * inv).astype(jnp.bfloat16)
        outs.append(jnp.dot(p, v, preferred_element_type=jnp.float32))
    # one lane-dense store per head group (group width is 128-aligned when possible)
    o_ref[0] = jnp.concatenate(outs, axis=-1).astype(o_ref.dtype)


# ----------------------------- kernel wrappers --------------------------------

def fused_linear(x, w, b, *, act=None, residual=None, out_dtype=jnp.bfloat16,
                 tm=512, tn=512, tk=1024):
    """y = act(x @ w + b) [+ residual]; bf16 MXU inputs, fp32 accumulation."""
    M, K = x.shape
    _, N = w.shape
    tm_ = _choose_tile(M, tm, 8)
    tn_ = _choose_tile(N, tn, 128)
    tk_ = _choose_tile(K, tk, 128)
    has_res = residual is not None

    cost = pl.CostEstimate(
        flops=2 * M * N * K,
        transcendentals=(M * N if act == "quickgelu" else 0),
        bytes_accessed=2 * (M * K + K * N + M * N) + (2 * M * N if has_res else 0) + 4 * N)

    if K // tk_ == 1:
        # single-shot K: no accumulator, no K grid axis
        in_specs = [pl.BlockSpec((tm_, K), lambda i, j: (i, 0)),
                    pl.BlockSpec((K, tn_), lambda i, j: (0, j)),
                    pl.BlockSpec((1, tn_), lambda i, j: (0, j))]
        args = [x, w, b]
        if has_res:
            args.append(residual)
            in_specs.append(pl.BlockSpec((tm_, tn_), lambda i, j: (i, j)))
        return pl.pallas_call(
            functools.partial(_linear_single_k_kernel, act=act, has_residual=has_res),
            out_shape=jax.ShapeDtypeStruct((M, N), out_dtype),
            grid=(M // tm_, N // tn_),
            in_specs=in_specs,
            out_specs=pl.BlockSpec((tm_, tn_), lambda i, j: (i, j)),
            compiler_params=pltpu.CompilerParams(
                dimension_semantics=("parallel", "parallel"),
                vmem_limit_bytes=_VMEM_LIMIT),
            cost_estimate=cost,
        )(*args)

    in_specs = [pl.BlockSpec((tm_, tk_), lambda i, j, k: (i, k)),
                pl.BlockSpec((tk_, tn_), lambda i, j, k: (k, j)),
                pl.BlockSpec((1, tn_), lambda i, j, k: (0, j))]
    args = [x, w, b]
    if has_res:
        args.append(residual)
        in_specs.append(pl.BlockSpec((tm_, tn_), lambda i, j, k: (i, j)))
    return pl.pallas_call(
        functools.partial(_linear_kernel, act=act, has_residual=has_res),
        out_shape=jax.ShapeDtypeStruct((M, N), out_dtype),
        grid=(M // tm_, N // tn_, K // tk_),
        in_specs=in_specs,
        out_specs=pl.BlockSpec((tm_, tn_), lambda i, j, k: (i, j)),
        scratch_shapes=[pltpu.VMEM((tm_, tn_), jnp.float32)],
        compiler_params=pltpu.CompilerParams(
            dimension_semantics=("parallel", "parallel", "arbitrary"),
            vmem_limit_bytes=_VMEM_LIMIT),
        cost_estimate=cost,
    )(*args)


def fused_ln_linear(x, g, bln, w, b, *, act=None, out_dtype=jnp.bfloat16,
                    tm=512, tn=512):
    """y = act(LayerNorm(x) @ w + b); LN fused as prologue, cached across N tiles."""
    M, K = x.shape
    _, N = w.shape
    tm_ = _choose_tile(M, tm, 8)
    tn_ = _choose_tile(N, tn, 128)

    cost = pl.CostEstimate(
        flops=2 * M * N * K + 8 * M * K,
        transcendentals=M + (M * N if act == "quickgelu" else 0),
        bytes_accessed=2 * (M * K + K * N + M * N) + 8 * K + 4 * N)

    return pl.pallas_call(
        functools.partial(_ln_linear_kernel, act=act),
        out_shape=jax.ShapeDtypeStruct((M, N), out_dtype),
        grid=(M // tm_, N // tn_),
        in_specs=[
            pl.BlockSpec((tm_, K), lambda i, j: (i, 0)),
            pl.BlockSpec((1, K), lambda i, j: (0, 0)),
            pl.BlockSpec((1, K), lambda i, j: (0, 0)),
            pl.BlockSpec((K, tn_), lambda i, j: (0, j)),
            pl.BlockSpec((1, tn_), lambda i, j: (0, j)),
        ],
        out_specs=pl.BlockSpec((tm_, tn_), lambda i, j: (i, j)),
        scratch_shapes=[pltpu.VMEM((tm_, K), jnp.bfloat16)],   # cached LN(x) tile
        # N axis must stay "arbitrary": the LN scratch is filled at j == 0.
        compiler_params=pltpu.CompilerParams(
            dimension_semantics=("parallel", "arbitrary"),
            vmem_limit_bytes=_VMEM_LIMIT),
        cost_estimate=cost,
    )(x, g, bln, w, b)


def pallas_add_pos_ln(x, pos, g, b):
    B, T, D = x.shape
    return pl.pallas_call(
        _add_pos_ln_kernel,
        out_shape=jax.ShapeDtypeStruct((B, T, D), jnp.bfloat16),
        grid=(B,),
        in_specs=[
            pl.BlockSpec((1, T, D), lambda i: (i, 0, 0)),
            pl.BlockSpec((T, D), lambda i: (0, 0)),
            pl.BlockSpec((1, D), lambda i: (0, 0)),
            pl.BlockSpec((1, D), lambda i: (0, 0)),
        ],
        out_specs=pl.BlockSpec((1, T, D), lambda i: (i, 0, 0)),
        compiler_params=pltpu.CompilerParams(dimension_semantics=("parallel",),
                                             vmem_limit_bytes=_VMEM_LIMIT),
    )(x, pos, g, b)


def pallas_attention(qkv, B, T, heads, dh, g_heads):
    """qkv: [B*T, 3*width] bf16 in per-head-group [q|k|v] layout -> [B*T, width] bf16."""
    width = heads * dh
    n_groups = heads // g_heads
    gw = 3 * g_heads * dh
    qkv3 = qkv.reshape(B, T, n_groups * gw)        # contiguous, no transpose
    out = pl.pallas_call(
        functools.partial(_attention_kernel, g_heads=g_heads, dh=dh,
                          scale=1.0 / math.sqrt(dh)),
        out_shape=jax.ShapeDtypeStruct((B, T, width), jnp.bfloat16),
        grid=(B, n_groups),                        # 2 parallel axes: feeds both v7x cores
        in_specs=[pl.BlockSpec((1, T, gw), lambda b, g: (b, 0, g))],
        out_specs=pl.BlockSpec((1, T, g_heads * dh), lambda b, g: (b, 0, g)),
        compiler_params=pltpu.CompilerParams(
            dimension_semantics=("parallel", "parallel"),
            vmem_limit_bytes=_VMEM_LIMIT),
    )(qkv3)
    return out.reshape(B * T, width)


# -------------------------- parameter initialization --------------------------

def init_clip_visual_params(key, *, in_ch, width, patch, img, layers, heads,
                            embed_dim):
    grid = img // patch
    tokens = grid * grid + 1
    mlp_dim = 4 * width
    dh = width // heads
    g_heads = _head_group(heads, dh)
    perm = _qkv_group_perm(width, heads, dh, g_heads)
    keys = iter(jax.random.split(key, 64))

    def nrm(shape, s=0.02):
        return (s * jax.random.normal(next(keys), shape)).astype(jnp.float32)

    bf16 = lambda a: a.astype(jnp.bfloat16)
    row = lambda a: a.reshape(1, -1).astype(jnp.float32)   # biases / LN params as (1, N)

    p = {
        # patch-conv weight pre-transposed to matmul layout [C*p*p, width], bf16.
        "conv_w": bf16(nrm((in_ch * patch * patch, width))),
        "conv_b": row(jnp.zeros((width,))),                 # conv1 has no bias
        "class_emb": nrm((width,)),
        "pos_emb": nrm((tokens, width)),
        "ln_pre_g": row(jnp.ones((width,))),
        "ln_pre_b": row(jnp.zeros((width,))),
        "ln_post_g": row(jnp.ones((width,))),
        "ln_post_b": row(jnp.zeros((width,))),
        "proj": bf16(nrm((width, embed_dim))),
        "proj_b": row(jnp.zeros((embed_dim,))),
        "blocks": [],
    }
    for _ in range(layers):
        qkv_w_std = nrm((width, 3 * width))                 # standard CLIP [q|k|v] layout
        qkv_b_std = jnp.zeros((3 * width,), jnp.float32)
        blk = {
            "ln1_g": row(jnp.ones((width,))),
            "ln1_b": row(jnp.zeros((width,))),
            # permuted once at init into per-head-group [q|k|v] column layout.
            "qkv_w": bf16(qkv_w_std[:, perm]),
            "qkv_b": row(qkv_b_std[perm]),
            "out_w": bf16(nrm((width, width))),
            "out_b": row(jnp.zeros((width,))),
            "ln2_g": row(jnp.ones((width,))),
            "ln2_b": row(jnp.zeros((width,))),
            "fc_w": bf16(nrm((width, mlp_dim))),
            "fc_b": row(jnp.zeros((mlp_dim,))),
            "cproj_w": bf16(nrm((mlp_dim, width))),
            "cproj_b": row(jnp.zeros((width,))),
        }
        p["blocks"].append(blk)
    cfg = dict(in_ch=in_ch, width=width, patch=patch, img=img, layers=layers,
               heads=heads, embed_dim=embed_dim, tokens=tokens, head_group=g_heads)
    return p, cfg


# ------------------------------- encode_image ---------------------------------

def encode_image(params, cfg, image):
    """Equivalent of ImageCLIP.forward(image) -> model.encode_image(image)."""
    B, C, H, W = image.shape
    p = cfg["patch"]
    width = cfg["width"]
    heads = cfg["heads"]
    dh = width // heads
    g_heads = cfg["head_group"]
    gh, gw = H // p, W // p
    npatch = gh * gw
    T = npatch + 1

    # --- patch conv (stride == kernel) lowered to the tiled matmul -----------
    # TODO(synk): patch extraction transpose + class-token concat stay in XLA
    # (pure layout plumbing, done once per forward).
    patches = image.reshape(B, C, gh, p, gw, p).transpose(0, 2, 4, 1, 3, 5)
    patches = patches.reshape(B * npatch, C * p * p).astype(jnp.bfloat16)
    x = fused_linear(patches, params["conv_w"], params["conv_b"])
    x = x.reshape(B, npatch, width)

    # --- prepend class token; (x + pos_emb) -> ln_pre fused in one kernel ----
    cls = jnp.broadcast_to(params["class_emb"].astype(jnp.bfloat16), (B, 1, width))
    x = jnp.concatenate([cls, x], axis=1)                       # [B, T, width] bf16
    x = pallas_add_pos_ln(x, params["pos_emb"],
                          params["ln_pre_g"], params["ln_pre_b"])

    # --- transformer (residual stream kept as lane-dense bf16 [B*T, width]) ---
    x2d = x.reshape(B * T, width)
    for blk in params["blocks"]:
        # attention sub-block: LN fused into QKV, residual fused into out_proj
        qkv = fused_ln_linear(x2d, blk["ln1_g"], blk["ln1_b"],
                              blk["qkv_w"], blk["qkv_b"])       # [B*T, 3*width] bf16
        attn = pallas_attention(qkv, B, T, heads, dh, g_heads)  # [B*T, width] bf16
        x2d = fused_linear(attn, blk["out_w"], blk["out_b"], residual=x2d)

        # MLP sub-block: LN + QuickGELU fused into c_fc, residual into c_proj
        h = fused_ln_linear(x2d, blk["ln2_g"], blk["ln2_b"],
                            blk["fc_w"], blk["fc_b"], act="quickgelu")
        x2d = fused_linear(h, blk["cproj_w"], blk["cproj_b"], residual=x2d)

    # --- ln_post on CLS token fused with the output projection ---------------
    cls_tok = x2d.reshape(B, T, width)[:, 0, :]                  # [B, width]
    out = fused_ln_linear(cls_tok, params["ln_post_g"], params["ln_post_b"],
                          params["proj"], params["proj_b"],
                          out_dtype=jnp.float32)
    return out                                                   # [B, embed_dim] fp32


# ----------------------------------- main --------------------------------------

if __name__ == "__main__":
    key = jax.random.PRNGKey(0)
    k_params, k_img = jax.random.split(key)

    # small, forward-consistent shapes: B=2, C=3, 16x16 image, patch 8,
    # width 32, 4 heads, 2 layers, embed_dim 16  ->  tokens T = 5.
    params, cfg = init_clip_visual_params(
        k_params, in_ch=3, width=32, patch=8, img=16, layers=2, heads=4,
        embed_dim=16)

    image = jax.random.normal(k_img, (2, 3, 16, 16), dtype=jnp.float32)

    feats = encode_image(params, cfg, image)   # ImageCLIP(model)(image)
    jax.block_until_ready(feats)
    assert feats.shape == (2, 16)
    print("KERNEL_OK")
</pallas_src>

<mosaic_0001>
module attributes {stable_mosaic.version = 11 : i64} {
  func.func @_linear_single_k_kernel(%arg0: i32, %arg1: i32, %arg2: memref<8x192xbf16, #tpu.memory_space<vmem>>, %arg3: memref<192x32xbf16, #tpu.memory_space<vmem>>, %arg4: memref<1x32xf32, #tpu.memory_space<vmem>>, %arg5: memref<8x32xbf16, #tpu.memory_space<vmem>>) attributes {dimension_semantics = [#tpu.dimension_semantics<parallel>, #tpu.dimension_semantics<parallel>], iteration_bounds = array<i64: 1, 1>, scalar_prefetch = 0 : i64, scratch_operands = 0 : i64, tpu.core_type = #tpu.core_type<tc>, window_params = [{transform_indices = @transform_0, window_bounds = array<i64: 8, 192>}, {transform_indices = @transform_1, window_bounds = array<i64: 192, 32>}, {transform_indices = @transform_2, window_bounds = array<i64: 1, 32>}, {transform_indices = @transform_3, window_bounds = array<i64: 8, 32>}]} {
    %c0 = arith.constant 0 : index
    %c0_0 = arith.constant 0 : index
    %0 = vector.load %arg2[%c0, %c0_0] : memref<8x192xbf16, #tpu.memory_space<vmem>>, vector<8x192xbf16>
    %c0_1 = arith.constant 0 : index
    %c0_2 = arith.constant 0 : index
    %1 = vector.load %arg3[%c0_1, %c0_2] : memref<192x32xbf16, #tpu.memory_space<vmem>>, vector<192x32xbf16>
    %cst = arith.constant dense<0.000000e+00> : vector<8x32xf32>
    %2 = tpu.matmul %0, %1, %cst {dimension_numbers = #tpu.dot_dimension_numbers<[1], [0], [0], [1], [0, 0, 1, 1], [], []>} : vector<8x192xbf16>, vector<192x32xbf16>, vector<8x32xf32> -> vector<8x32xf32>
    %c0_3 = arith.constant 0 : index
    %c0_4 = arith.constant 0 : index
    %3 = vector.load %arg4[%c0_3, %c0_4] : memref<1x32xf32, #tpu.memory_space<vmem>>, vector<1x32xf32>
    %4 = vector.broadcast %3 : vector<1x32xf32> to vector<8x32xf32>
    %5 = arith.addf %2, %4 : vector<8x32xf32>
    %6 = arith.truncf %5 : vector<8x32xf32> to vector<8x32xbf16>
    %c0_5 = arith.constant 0 : index
    %c0_6 = arith.constant 0 : index
    %7 = vector.load %arg5[%c0_5, %c0_6] : memref<8x32xbf16, #tpu.memory_space<vmem>>, vector<8x32xbf16>
    tpu.vector_store %arg5[%c0_5, %c0_6], %6 {strides = array<i32>} : memref<8x32xbf16, #tpu.memory_space<vmem>>, vector<8x32xbf16>,
    return
  }
  func.func @transform_0(%arg0: i32, %arg1: i32) -> (i32, i32) {
    %c0_i32 = arith.constant 0 : i32
    %c0_i32_0 = arith.constant 0 : i32
    return %arg0, %c0_i32 : i32, i32
  }
  func.func @transform_1(%arg0: i32, %arg1: i32) -> (i32, i32) {
    %c0_i32 = arith.constant 0 : i32
    %c0_i32_0 = arith.constant 0 : i32
    return %c0_i32, %arg1 : i32, i32
  }
  func.func @transform_2(%arg0: i32, %arg1: i32) -> (i32, i32) {
    %c0_i32 = arith.constant 0 : i32
    %c0_i32_0 = arith.constant 0 : i32
    return %c0_i32, %arg1 : i32, i32
  }
  func.func @transform_3(%arg0: i32, %arg1: i32) -> (i32, i32) {
    %c0_i32 = arith.constant 0 : i32
    return %arg0, %arg1 : i32, i32
  }
}

</mosaic_0001>

<bundles_post_ra>
// kernel: tpu_custom_call.1
= control target key start
LH: loop header
LB: loop body
LE: loop exit
PB: predicated region body
PF: predicated region fallthrough
CT: control target
= control target key end

     0   :  { %v243_v1 = vmov 0   ;;  %vm126_vm0 = vcmask 523264   ;;  %s319_s0 = inlined_call_operand.vmem [shape: bf16[8,192], index: 0, kind: input, shape index: {}]   ;;  %s320_s1 = inlined_call_operand.vmem [shape: bf16[192,32], index: 1, kind: input, shape index: {}]   ;;  %s321_s2 = inlined_call_operand.vmem [shape: f32[1,32], index: 2, kind: input, shape index: {}]   ;;  %s322_s3 = inlined_call_operand.hbm [shape: bf16[8,32], index: 3, kind: output, shape index: {}]  }
   0x1   :  { %v205_v0 = vld [vmem:[%s320_s1] sm:$0xff]   ;;  %130 = vmatprep.subr.bf16.mxu0 %v243_v1  ;;  %v206_v2 = vld [vmem:[%s320_s1 + $0x8] sm:$0xff]   ;;  %v207_v3 = vld [vmem:[%s320_s1 + $0x10] sm:$0xff]  }
   0x2   :  { %131 = vmatpush1.bf16.msra.mxu0 %v205_v0  ;;  %v208_v4 = vld [vmem:[%s320_s1 + $0x18] sm:$0xff]   ;;  %v16_v5 = vld [vmem:[%s319_s0] sm:$0xff] }
   0x3   :  { %132 = vmatprep.subr.bf16.mxu0 %v243_v1 }
   0x6   :  { %133 = vmatpush1.bf16.msra.mxu0 %v206_v2 }
   0x7   :  { %134 = vmatprep.subr.bf16.mxu0 %v243_v1 }
   0xa   :  { %135 = vmatpush1.bf16.msra.mxu0 %v207_v3 }
   0xb   :  { %136 = vmatprep.subr.bf16.mxu0 %v243_v1 }
   0xc   :  { %8 = vsyncpa [#allocation3], 0  ;;  %v189_v6 = vcombine.high %v16_v5, %v16_v5  ;;  %v209_v7 = vld [vmem:[%s320_s1 + $0x20] sm:$0xff]   ;;  %v210_v8 = vld [vmem:[%s320_s1 + $0x28] sm:$0xff]   ;;  %v188_v15 = vcombine.low %v16_v5, %v16_v5  ;;  %s244_s12 = smov [#allocation2]   ;;  %vm171_vm1 = vcmask 257024  }
   0xd   :  { %v211_v9 = vld [vmem:[%s320_s1 + $0x30] sm:$0xff]   ;;  %v212_v10 = vld [vmem:[%s320_s1 + $0x38] sm:$0xff]   ;;  %v213_v11 = vld [vmem:[%s320_s1 + $0x40] sm:$0xff]   ;;  %s179_s13 = sshll.u32 %s244_s12, 4  ;;  %s180_s13 = int_to_ptr.vmem [resolvable:$true] %s179_s13 }
   0xe   :  { %137 = vmatpush1.bf16.msra.mxu0 %v208_v4  ;;  %202 = vmatprep.mubr.msk.bf16.mxu0 %vm126_vm0, %v189_v6  ;;  %v214_v12 = vld [vmem:[%s320_s1 + $0x48] sm:$0xff]   ;;  %v215_v13 = vld [vmem:[%s320_s1 + $0x50] sm:$0xff]   ;;  %v216_v14 = vld [vmem:[%s320_s1 + $0x58] sm:$0xff]   ;;  %s219_s1 = scalar_lea.vmem %s180_s13, 64  ;;  %p224_p1 = scmp.lt.s32.totalorder %s180_s13, %s180_s13 }
   0xf   :  { %138 = vmatprep.subr.bf16.mxu0 %v243_v1  ;;  %v187_v16 = vld [vmem:[%s321_s2] ss:$0 sm:$0xff]  ;;  %p220_p0 = scmp.ne.s32.totalorder %s180_s13, %s219_s1  ;;  %p225_p2 = scmp.lt.s32.totalorder %s219_s1, %s219_s1 }
  0x11   :  { %p226_p3 = por %p225_p2, %p224_p1 }
  0x12   :  { %139 = vmatpush1.bf16.msra.mxu0 %v209_v7 }
  0x13   :  { %140 = vmatprep.subr.bf16.mxu0 %v243_v1  ;;  %p227_p4 = pnand %p226_p3, %p220_p0 }
  0x16   :  { %141 = vmatpush1.bf16.msra.mxu0 %v210_v8 }
  0x17   :  { %142 = vmatprep.subr.bf16.mxu0 %v243_v1 }
  0x1a   :  { %143 = vmatpush1.bf16.msra.mxu0 %v211_v9 }
  0x1b   :  { %144 = vmatprep.subr.bf16.mxu0 %v243_v1 }
  0x1e   :  { %145 = vmatpush1.bf16.msra.mxu0 %v212_v10 }
  0x1f   :  { %146 = vmatprep.subr.bf16.mxu0 %v243_v1 }
  0x22   :  { %147 = vmatpush1.bf16.msra.mxu0 %v213_v11 }
  0x23   :  { %148 = vmatprep.subr.bf16.mxu0 %v243_v1 }
  0x26   :  { %149 = vmatpush1.bf16.msra.mxu0 %v214_v12 }
  0x27   :  { %150 = vmatprep.subr.bf16.mxu0 %v243_v1 }
  0x2a   :  { %151 = vmatpush1.bf16.msra.mxu0 %v215_v13 }
  0x2b   :  { %152 = vmatprep.subr.bf16.mxu0 %v243_v1 }
  0x2e   :  { %153 = vmatpush1.bf16.msra.mxu0 %v216_v14 }
  0x31   :  { %163 = vmatmul.mubr.bf16.vlgmr.msra.gmra.mrb[0].mxu0 %v188_v15 }
 0x104   :  { %v164_v17 = vpop.f32.mrb[0].mxu0 }
 0x105   :  { %v165_v18 = vadd.f32 %v187_v16, %v164_v17  ;;  %v166_v19 = vpop.f32.mrb[1].mxu0 }
 0x106   :  { %v167_v20 = vpop.f32.mrb[2].mxu0 }
 0x107   :  { %v170_v21 = vpack.c.bf16 %v165_v18, %v165_v18  ;;  %v168_v22 = vpop.f32.mrb[3].mxu0 }
 0x109   :  { %172 = vst.msk [vmem:[#allocation2] sm:$0xf] %vm171_vm1, %v170_v21 }
 0x10a   :  { %230 = shalt.err (!%p227_p4)
}
 0x10b   :  { %s231_s15 = scalar_lea.hbm %s322_s3, 64 }
 0x10c   :  { %p232_p5 = scmp.ne.s32.totalorder %s322_s3, %s231_s15  ;;  %p235_p6 = scmp.lt.u32.totalorder %s231_s15, %s322_s3 }
 0x10e   :  { %p237_p7 = pnand %p235_p6, %p232_p5 }
 0x110   :  { %240 = shalt.err (!%p237_p7)
}
 0x111   :  { %182 = dma.vmem_to_hbm [thread:$0]  %s180_s13, 64, %s322_s3, [#allocation3]  }
 0x112   :  { %241 = dma.done.wait [#allocation3], 64  }
 0x113   :  { %242 = vsyncadd [#allocation3], 4294967232 }
 0x114   :  { %186 = vsyncpa [#allocation3], 1 }

</bundles_post_ra>
